<compile_context>
chip_gen: v7x
topology: tpu7x:2x2x1
jax: 0.10.0
libtpu: 0.0.40
codegen_flags: <defaults>
</compile_context>

<pallas_src>
import functools

import jax
import jax.numpy as jnp
from jax.experimental import pallas as pl
from jax.experimental.pallas import tpu as pltpu


# ----------------------------- configuration -------------------------------
class Config:
    hidden_size = 32
    num_query_heads = 4
    num_key_value_heads = 2
    layer_norm_eps = 1e-5
    qk_norm = True
    qk_norm_scale = None

    @property
    def head_dim(self):
        return self.hidden_size // self.num_query_heads

    @property
    def qk_scale(self):
        return self.qk_norm_scale or self.head_dim ** (-0.5)


# ------------------------------- the kernel --------------------------------
def _mqa_kernel(
    x_ref, wqkv_ref, bqkv_ref, pool_ref, poolt_ref, ln_g_ref, ln_b_ref,
    wo_ref, bo_ref, o_ref,
    *, B_blk, S, HQ, HKV, D, scale, eps, qk_norm, fold, fold_n, approx_recip,
):
    N = B_blk * S
    H = wo_ref.shape[-1]
    x = x_ref[0]                       # (N, H) tokens-major, MXU compute dtype
    cdt = x.dtype                      # f32 or bf16 (MXU operand dtype)

    # ---- single fused Q|K|V projection (one MXU push, f32 accumulation) ----
    qkv = jnp.dot(x, wqkv_ref[...],
                  preferred_element_type=jnp.float32) + bqkv_ref[...]

    nqk = (HQ + HKV) * D
    if qk_norm:
        # Merged per-head LayerNorm over the q|k slab: per-head mean/var via
        # block-diagonal pooling matmuls (two-pass, centered variance).
        t = qkv[:, :nqk]
        inv_d = 1.0 / D
        mean = jnp.dot(t, pool_ref[...],
                       preferred_element_type=jnp.float32) * inv_d
        mean_b = jnp.dot(mean, poolt_ref[...],
                         preferred_element_type=jnp.float32)
        cen = t - mean_b
        var = jnp.dot(cen * cen, pool_ref[...],
                      preferred_element_type=jnp.float32) * inv_d
        inv_std = jax.lax.rsqrt(var + eps)
        inv_b = jnp.dot(inv_std, poolt_ref[...],
                        preferred_element_type=jnp.float32)
        qk = cen * inv_b * ln_g_ref[...] + ln_b_ref[...]
        q = qk[:, :HQ * D] * scale     # softmax scale folded into q
        k = qk[:, HQ * D:]
    else:
        q = qkv[:, :HQ * D] * scale
        k = qkv[:, HQ * D:nqk]
    v = qkv[:, nqk:]

    q = q.astype(cdt)

    # ---- attention: one batched matmul pair per kv group --------------------
    rep = HQ // HKV
    ctx_heads = []
    for grp in range(HKV):
        kg = k[:, grp * D:(grp + 1) * D].reshape(B_blk, S, D).astype(cdt)
        vg = v[:, grp * D:(grp + 1) * D].reshape(B_blk, S, D).astype(cdt)
        # Stack the `rep` query heads that share this kv head along the query
        # (sublane) axis -> one score matmul / one ctx matmul per group.
        qg = jnp.concatenate(
            [q[:, (grp * rep + j) * D:(grp * rep + j + 1) * D].reshape(B_blk, S, D)
             for j in range(rep)], axis=1)                  # (B_blk, rep*S, D)
        s = jnp.einsum("bqd,bkd->bqk", qg, kg,
                       preferred_element_type=jnp.float32)  # (B_blk, rep*S, S)
        # TODO(synk): optional additive attention_mask (module default None)
        # would be added to `s` here.
        s = s - jnp.max(s, axis=-1, keepdims=True)
        p = jnp.exp(s)
        denom = jnp.sum(p, axis=-1, keepdims=True)
        if approx_recip:
            p = p * pl.reciprocal(denom, approx=True)       # EUP slot (bf16 path)
        else:
            p = p / denom                                    # exact on f32 path
        cg = jnp.einsum("bqk,bkd->bqd", p.astype(cdt), vg,
                        preferred_element_type=jnp.float32)  # (B_blk, rep*S, D)
        for j in range(rep):
            ctx_heads.append(cg[:, j * S:(j + 1) * S, :].reshape(N, D))

    # ---- fused output projection (single matmul, K = HQ*D) ------------------
    ctx = jnp.concatenate(ctx_heads, axis=-1)                # (N, HQ*D)
    out = jnp.dot(ctx.astype(cdt), wo_ref[...],
                  preferred_element_type=jnp.float32) + bo_ref[...]
    out = out.astype(o_ref.dtype)

    # ---- lane-dense store (row-major fold -> wrapper un-fold is a reshape) --
    if fold:
        nf = N // fold_n
        o_ref[0] = out.reshape(nf, fold_n * H)
    else:
        o_ref[0] = out


# ------------------------------ the wrapper --------------------------------
def multi_query_attention(x, params, cfg: Config, *, block_b=None,
                          mxu_dtype=jnp.float32, out_dtype=None,
                          single_buffer_weights=True):
    B, S, H = x.shape
    HQ, HKV, D = cfg.num_query_heads, cfg.num_key_value_heads, cfg.head_dim
    out_dtype = out_dtype or jnp.float32

    # Default to >= 2 grid steps: pipelines the per-block x DMA behind compute
    # on every chip and lets the "parallel" axis shard over v7x's two TCs.
    if block_b is None:
        block_b = B // 2 if (B >= 2 and B % 2 == 0) else B
    assert B % block_b == 0
    n_blocks = B // block_b
    N = block_b * S

    # Lane-dense fold: pack fold_n consecutive tokens into one 128-lane output
    # row (unmasked vst).  Un-folding is a pure reshape.
    fold = (H < 128 and 128 % H == 0 and N % (128 // H) == 0)
    fold_n = 128 // H if fold else 1
    nf = N // fold_n

    # ---- one-time parameter prep (outside the kernel) ----------------------
    nqk = (HQ + HKV) * D
    w_qkv = jnp.concatenate([params["wq"], params["wk"], params["wv"]],
                            axis=1).astype(mxu_dtype)           # (H, HQ*D+2*HKV*D)
    b_qkv = jnp.concatenate([params["bq"], params["bk"], params["bv"]],
                            axis=1).astype(jnp.float32)
    wo = params["wo"].astype(mxu_dtype)
    bo = params["bo"].astype(jnp.float32)
    gamma_qk = jnp.concatenate([jnp.tile(params["qg"], (1, HQ)),
                                jnp.tile(params["kg"], (1, HKV))], axis=1)
    beta_qk = jnp.concatenate([jnp.tile(params["qb"], (1, HQ)),
                               jnp.tile(params["kb"], (1, HKV))], axis=1)
    # Block-diagonal pooling matrices for the segmented per-head LayerNorm.
    head_of_col = jnp.arange(nqk, dtype=jnp.int32) // D
    pool = (head_of_col[:, None]
            == jnp.arange(HQ + HKV, dtype=jnp.int32)[None, :]).astype(jnp.float32)
    poolt = pool.T

    x3 = x.reshape(n_blocks, N, H).astype(mxu_dtype)
    approx_recip = jnp.dtype(mxu_dtype) != jnp.dtype(jnp.float32)

    def run(use_fold, use_buffered):
        kernel = functools.partial(
            _mqa_kernel, B_blk=block_b, S=S, HQ=HQ, HKV=HKV, D=D,
            scale=float(cfg.qk_scale), eps=float(cfg.layer_norm_eps),
            qk_norm=cfg.qk_norm, fold=use_fold, fold_n=fold_n,
            approx_recip=approx_recip)

        def wspec(shape):
            # Grid-invariant weights: single-buffered (half the VMEM, no
            # per-step DMA bookkeeping) when requested.
            kw = {"pipeline_mode": pl.Buffered(1)} if use_buffered else {}
            return pl.BlockSpec(shape, lambda b: (0,) * len(shape), **kw)

        in_specs = [
            pl.BlockSpec((1, N, H), lambda b: (b, 0, 0)),    # x block
            wspec((H, HQ * D + 2 * HKV * D)),                # fused W_qkv
            wspec((1, HQ * D + 2 * HKV * D)),                # fused bias
            wspec((nqk, HQ + HKV)),                          # LN pool
            wspec((HQ + HKV, nqk)),                          # LN poolT
            wspec((1, nqk)),                                  # LN gamma (tiled)
            wspec((1, nqk)),                                  # LN beta  (tiled)
            wspec((HQ * D, H)),                               # wo
            wspec((1, H)),                                    # bo
        ]
        if use_fold:
            out_shape = jax.ShapeDtypeStruct((n_blocks, nf, fold_n * H), out_dtype)
            out_spec = pl.BlockSpec((1, nf, fold_n * H), lambda b: (b, 0, 0))
        else:
            out_shape = jax.ShapeDtypeStruct((n_blocks, N, H), out_dtype)
            out_spec = pl.BlockSpec((1, N, H), lambda b: (b, 0, 0))

        # TODO(synk): for production sizes (H>=1024, S>=1k) add a KV grid axis
        # (last, "arbitrary") with flash-style online softmax in VMEM scratch
        # and tile W_qkv / wo along the contraction dim, so neither the (S,S)
        # scores nor the f32 weights must be fully VMEM-resident (v7x has only
        # 64 MiB physical VMEM).
        return pl.pallas_call(
            kernel,
            out_shape=out_shape,
            grid_spec=pltpu.PrefetchScalarGridSpec(
                num_scalar_prefetch=0,
                grid=(n_blocks,),
                in_specs=in_specs,
                out_specs=out_spec),
            compiler_params=pltpu.CompilerParams(
                dimension_semantics=("parallel",),
                vmem_limit_bytes=32 * 1024 * 1024),
        )(x3, w_qkv, b_qkv, pool, poolt, gamma_qk, beta_qk, wo, bo)

    # Primary: lane-dense folded store + single-buffered weights.  Fallback
    # (only if this Mosaic build rejects the in-kernel fold reshape or
    # Buffered(1)): token-major store with default double buffering.  The
    # fallback trigger only works when called eagerly (as this script does);
    # under jit pass single_buffer_weights=False if needed.
    try:
        out = run(fold, single_buffer_weights)
    except Exception:
        out = run(False, False)

    return out.reshape(B, S, H)          # pure reshape for both layouts


# ------------------------- pure-JAX reference check ------------------------
def _reference(x, p, cfg: Config):
    B, S, H = x.shape
    HQ, HKV, D = cfg.num_query_heads, cfg.num_key_value_heads, cfg.head_dim
    eps, scale = cfg.layer_norm_eps, cfg.qk_scale

    def ln(t, g, b):
        mu = t.mean(-1, keepdims=True)
        var = ((t - mu) ** 2).mean(-1, keepdims=True)
        return (t - mu) / jnp.sqrt(var + eps) * g + b

    q = (x @ p["wq"] + p["bq"][0]).reshape(B, S, HQ, D)
    k = (x @ p["wk"] + p["bk"][0]).reshape(B, S, HKV, D)
    v = (x @ p["wv"] + p["bv"][0]).reshape(B, S, HKV, D)
    if cfg.qk_norm:
        q = ln(q, p["qg"][0], p["qb"][0])
        k = ln(k, p["kg"][0], p["kb"][0])
    k = jnp.repeat(k, HQ // HKV, axis=2)
    v = jnp.repeat(v, HQ // HKV, axis=2)
    q, k, v = (t.transpose(0, 2, 1, 3) for t in (q, k, v))
    s = jnp.einsum("bhqd,bhkd->bhqk", q, k) * scale
    a = jax.nn.softmax(s, axis=-1)
    o = jnp.einsum("bhqk,bhkd->bhqd", a, v)
    o = o.transpose(0, 2, 1, 3).reshape(B, S, HQ * D)
    return o @ p["wo"] + p["bo"][0]


# ----------------------------------- main -----------------------------------
if __name__ == "__main__":
    cfg = Config()
    B, S, H = 2, 8, cfg.hidden_size
    HQ, HKV, D = cfg.num_query_heads, cfg.num_key_value_heads, cfg.head_dim

    key = jax.random.PRNGKey(0)
    keys = jax.random.split(key, 13)

    params = {
        "wq": 0.05 * jax.random.normal(keys[0], (H, HQ * D), jnp.float32),
        "bq": 0.05 * jax.random.normal(keys[1], (1, HQ * D), jnp.float32),
        "wk": 0.05 * jax.random.normal(keys[2], (H, HKV * D), jnp.float32),
        "bk": 0.05 * jax.random.normal(keys[3], (1, HKV * D), jnp.float32),
        "wv": 0.05 * jax.random.normal(keys[4], (H, HKV * D), jnp.float32),
        "bv": 0.05 * jax.random.normal(keys[5], (1, HKV * D), jnp.float32),
        "qg": 1.0 + 0.1 * jax.random.normal(keys[6], (1, D), jnp.float32),
        "qb": 0.1 * jax.random.normal(keys[7], (1, D), jnp.float32),
        "kg": 1.0 + 0.1 * jax.random.normal(keys[8], (1, D), jnp.float32),
        "kb": 0.1 * jax.random.normal(keys[9], (1, D), jnp.float32),
        "wo": 0.05 * jax.random.normal(keys[10], (HQ * D, H), jnp.float32),
        "bo": 0.05 * jax.random.normal(keys[11], (1, H), jnp.float32),
    }
    x = jax.random.normal(keys[12], (B, S, H), jnp.float32)

    ref = _reference(x, params, cfg)

    # f32 MXU path (exact softmax division, two-pass LayerNorm variance).
    out = multi_query_attention(x, params, cfg)
    out = jax.block_until_ready(out)
    assert out.shape == (B, S, H)
    assert jnp.allclose(out, ref, atol=1e-3, rtol=1e-3), "f32 kernel mismatch"

    # bf16 MXU path (fast path on v5e/v6e/v7x): bf16 operands, f32 accumulate.
    out_bf16 = multi_query_attention(x, params, cfg, mxu_dtype=jnp.bfloat16)
    out_bf16 = jax.block_until_ready(out_bf16)
    assert jnp.allclose(out_bf16, ref, atol=3e-2, rtol=3e-2), "bf16 kernel mismatch"

    print("KERNEL_OK")
</pallas_src>

<mosaic_0001>
module attributes {stable_mosaic.version = 11 : i64} {
  func.func @_mqa_kernel(%arg0: i32, %arg1: memref<1x8x32xf32, #tpu.memory_space<vmem>>, %arg2: memref<32x64xf32, #tpu.memory_space<vmem>>, %arg3: memref<1x64xf32, #tpu.memory_space<vmem>>, %arg4: memref<48x6xf32, #tpu.memory_space<vmem>>, %arg5: memref<6x48xf32, #tpu.memory_space<vmem>>, %arg6: memref<1x48xf32, #tpu.memory_space<vmem>>, %arg7: memref<1x48xf32, #tpu.memory_space<vmem>>, %arg8: memref<32x32xf32, #tpu.memory_space<vmem>>, %arg9: memref<1x32xf32, #tpu.memory_space<vmem>>, %arg10: memref<1x2x128xf32, #tpu.memory_space<vmem>>) attributes {dimension_semantics = [#tpu.dimension_semantics<parallel>], iteration_bounds = array<i64: 2>, scalar_prefetch = 0 : i64, scratch_operands = 0 : i64, tpu.core_type = #tpu.core_type<tc>, window_params = [{transform_indices = @transform_0, window_bounds = array<i64: 1, 8, 32>}, {pipeline_mode = #tpu.pipeline_mode<synchronous>, transform_indices = @transform_1, window_bounds = array<i64: 32, 64>}, {pipeline_mode = #tpu.pipeline_mode<synchronous>, transform_indices = @transform_2, window_bounds = array<i64: 1, 64>}, {pipeline_mode = #tpu.pipeline_mode<synchronous>, transform_indices = @transform_3, window_bounds = array<i64: 48, 6>}, {pipeline_mode = #tpu.pipeline_mode<synchronous>, transform_indices = @transform_4, window_bounds = array<i64: 6, 48>}, {pipeline_mode = #tpu.pipeline_mode<synchronous>, transform_indices = @transform_5, window_bounds = array<i64: 1, 48>}, {pipeline_mode = #tpu.pipeline_mode<synchronous>, transform_indices = @transform_6, window_bounds = array<i64: 1, 48>}, {pipeline_mode = #tpu.pipeline_mode<synchronous>, transform_indices = @transform_7, window_bounds = array<i64: 32, 32>}, {pipeline_mode = #tpu.pipeline_mode<synchronous>, transform_indices = @transform_8, window_bounds = array<i64: 1, 32>}, {transform_indices = @transform_9, window_bounds = array<i64: 1, 2, 128>}]} {
    %c0 = arith.constant 0 : index
    %c0_0 = arith.constant 0 : index
    %c0_1 = arith.constant 0 : index
    %0 = vector.load %arg1[%c0, %c0_0, %c0_1] : memref<1x8x32xf32, #tpu.memory_space<vmem>>, vector<1x8x32xf32>
    %1 = vector.shape_cast %0 : vector<1x8x32xf32> to vector<8x32xf32>
    %c0_2 = arith.constant 0 : index
    %c0_3 = arith.constant 0 : index
    %2 = vector.load %arg2[%c0_2, %c0_3] : memref<32x64xf32, #tpu.memory_space<vmem>>, vector<32x64xf32>
    %cst = arith.constant dense<0.000000e+00> : vector<8x64xf32>
    %3 = tpu.matmul %1, %2, %cst {dimension_numbers = #tpu.dot_dimension_numbers<[1], [0], [0], [1], [0, 0, 1, 1], [], []>} : vector<8x32xf32>, vector<32x64xf32>, vector<8x64xf32> -> vector<8x64xf32>
    %c0_4 = arith.constant 0 : index
    %c0_5 = arith.constant 0 : index
    %4 = vector.load %arg3[%c0_4, %c0_5] : memref<1x64xf32, #tpu.memory_space<vmem>>, vector<1x64xf32>
    %5 = vector.broadcast %4 : vector<1x64xf32> to vector<8x64xf32>
    %6 = arith.addf %3, %5 : vector<8x64xf32>
    %7 = vector.extract_strided_slice %6 {offsets = [0, 0], sizes = [8, 48], strides = [1, 1]} : vector<8x64xf32> to vector<8x48xf32>
    %c0_6 = arith.constant 0 : index
    %c0_7 = arith.constant 0 : index
    %8 = vector.load %arg4[%c0_6, %c0_7] : memref<48x6xf32, #tpu.memory_space<vmem>>, vector<48x6xf32>
    %cst_8 = arith.constant dense<0.000000e+00> : vector<8x6xf32>
    %9 = tpu.matmul %7, %8, %cst_8 {dimension_numbers = #tpu.dot_dimension_numbers<[1], [0], [0], [1], [0, 0, 1, 1], [], []>} : vector<8x48xf32>, vector<48x6xf32>, vector<8x6xf32> -> vector<8x6xf32>
    %cst_9 = arith.constant 1.250000e-01 : f32
    %10 = vector.broadcast %cst_9 : f32 to vector<8x6xf32>
    %11 = arith.mulf %9, %10 : vector<8x6xf32>
    %c0_10 = arith.constant 0 : index
    %c0_11 = arith.constant 0 : index
    %12 = vector.load %arg5[%c0_10, %c0_11] : memref<6x48xf32, #tpu.memory_space<vmem>>, vector<6x48xf32>
    %cst_12 = arith.constant dense<0.000000e+00> : vector<8x48xf32>
    %13 = tpu.matmul %11, %12, %cst_12 {dimension_numbers = #tpu.dot_dimension_numbers<[1], [0], [0], [1], [0, 0, 1, 1], [], []>} : vector<8x6xf32>, vector<6x48xf32>, vector<8x48xf32> -> vector<8x48xf32>
    %14 = arith.subf %7, %13 : vector<8x48xf32>
    %15 = arith.mulf %14, %14 : vector<8x48xf32>
    %c0_13 = arith.constant 0 : index
    %c0_14 = arith.constant 0 : index
    %16 = vector.load %arg4[%c0_13, %c0_14] : memref<48x6xf32, #tpu.memory_space<vmem>>, vector<48x6xf32>
    %cst_15 = arith.constant dense<0.000000e+00> : vector<8x6xf32>
    %17 = tpu.matmul %15, %16, %cst_15 {dimension_numbers = #tpu.dot_dimension_numbers<[1], [0], [0], [1], [0, 0, 1, 1], [], []>} : vector<8x48xf32>, vector<48x6xf32>, vector<8x6xf32> -> vector<8x6xf32>
    %cst_16 = arith.constant 1.250000e-01 : f32
    %18 = vector.broadcast %cst_16 : f32 to vector<8x6xf32>
    %19 = arith.mulf %17, %18 : vector<8x6xf32>
    %cst_17 = arith.constant 9.99999974E-6 : f32
    %20 = vector.broadcast %cst_17 : f32 to vector<8x6xf32>
    %21 = arith.addf %19, %20 : vector<8x6xf32>
    %22 = math.rsqrt %21 : vector<8x6xf32>
    %c0_18 = arith.constant 0 : index
    %c0_19 = arith.constant 0 : index
    %23 = vector.load %arg5[%c0_18, %c0_19] : memref<6x48xf32, #tpu.memory_space<vmem>>, vector<6x48xf32>
    %cst_20 = arith.constant dense<0.000000e+00> : vector<8x48xf32>
    %24 = tpu.matmul %22, %23, %cst_20 {dimension_numbers = #tpu.dot_dimension_numbers<[1], [0], [0], [1], [0, 0, 1, 1], [], []>} : vector<8x6xf32>, vector<6x48xf32>, vector<8x48xf32> -> vector<8x48xf32>
    %25 = arith.mulf %14, %24 : vector<8x48xf32>
    %c0_21 = arith.constant 0 : index
    %c0_22 = arith.constant 0 : index
    %26 = vector.load %arg6[%c0_21, %c0_22] : memref<1x48xf32, #tpu.memory_space<vmem>>, vector<1x48xf32>
    %27 = vector.broadcast %26 : vector<1x48xf32> to vector<8x48xf32>
    %28 = arith.mulf %25, %27 : vector<8x48xf32>
    %c0_23 = arith.constant 0 : index
    %c0_24 = arith.constant 0 : index
    %29 = vector.load %arg7[%c0_23, %c0_24] : memref<1x48xf32, #tpu.memory_space<vmem>>, vector<1x48xf32>
    %30 = vector.broadcast %29 : vector<1x48xf32> to vector<8x48xf32>
    %31 = arith.addf %28, %30 : vector<8x48xf32>
    %32 = vector.extract_strided_slice %31 {offsets = [0, 0], sizes = [8, 32], strides = [1, 1]} : vector<8x48xf32> to vector<8x32xf32>
    %cst_25 = arith.constant 0.353553385 : f32
    %33 = vector.broadcast %cst_25 : f32 to vector<8x32xf32>
    %34 = arith.mulf %32, %33 : vector<8x32xf32>
    %35 = vector.extract_strided_slice %31 {offsets = [0, 32], sizes = [8, 16], strides = [1, 1]} : vector<8x48xf32> to vector<8x16xf32>
    %36 = vector.extract_strided_slice %6 {offsets = [0, 48], sizes = [8, 16], strides = [1, 1]} : vector<8x64xf32> to vector<8x16xf32>
    %37 = vector.extract_strided_slice %35 {offsets = [0, 0], sizes = [8, 8], strides = [1, 1]} : vector<8x16xf32> to vector<8x8xf32>
    %38 = vector.shape_cast %37 : vector<8x8xf32> to vector<1x8x8xf32>
    %39 = vector.extract_strided_slice %36 {offsets = [0, 0], sizes = [8, 8], strides = [1, 1]} : vector<8x16xf32> to vector<8x8xf32>
    %40 = vector.shape_cast %39 : vector<8x8xf32> to vector<1x8x8xf32>
    %41 = vector.extract_strided_slice %34 {offsets = [0, 0], sizes = [8, 8], strides = [1, 1]} : vector<8x32xf32> to vector<8x8xf32>
    %42 = vector.shape_cast %41 : vector<8x8xf32> to vector<1x8x8xf32>
    %43 = vector.extract_strided_slice %34 {offsets = [0, 8], sizes = [8, 8], strides = [1, 1]} : vector<8x32xf32> to vector<8x8xf32>
    %44 = vector.shape_cast %43 : vector<8x8xf32> to vector<1x8x8xf32>
    %45 = tpu.concatenate %42, %44 in 1 : vector<1x8x8xf32>, vector<1x8x8xf32> -> vector<1x16x8xf32>
    "tpu.trace_start"() <{level = 10 : i32, message = "bqd,bkd->bqk"}> : () -> ()
    %cst_26 = arith.constant dense<0.000000e+00> : vector<1x16x8xf32>
    %46 = tpu.matmul %45, %38, %cst_26 {dimension_numbers = #tpu.dot_dimension_numbers<[2], [2], [1], [1], [0, 0, 0, 1, 1, 1], [0], [0]>} : vector<1x16x8xf32>, vector<1x8x8xf32>, vector<1x16x8xf32> -> vector<1x16x8xf32>
    "tpu.trace_stop"() : () -> ()
    %cst_27 = arith.constant dense<0xFF800000> : vector<1x16xf32>
    %47 = vector.multi_reduction <maximumf>, %46, %cst_27 [2] : vector<1x16x8xf32> to vector<1x16xf32>
    %48 = vector.shape_cast %47 : vector<1x16xf32> to vector<1x16x1xf32>
    %49 = vector.broadcast %48 : vector<1x16x1xf32> to vector<1x16x8xf32>
    %50 = arith.subf %46, %49 : vector<1x16x8xf32>
    %51 = math.exp %50 : vector<1x16x8xf32>
    %cst_28 = arith.constant dense<0.000000e+00> : vector<1x16xf32>
    %52 = vector.multi_reduction <add>, %51, %cst_28 [2] : vector<1x16x8xf32> to vector<1x16xf32>
    %53 = vector.shape_cast %52 : vector<1x16xf32> to vector<1x16x1xf32>
    %54 = vector.broadcast %53 : vector<1x16x1xf32> to vector<1x16x8xf32>
    %55 = arith.divf %51, %54 : vector<1x16x8xf32>
    "tpu.trace_start"() <{level = 10 : i32, message = "bqk,bkd->bqd"}> : () -> ()
    %cst_29 = arith.constant dense<0.000000e+00> : vector<1x16x8xf32>
    %56 = tpu.matmul %55, %40, %cst_29 {dimension_numbers = #tpu.dot_dimension_numbers<[2], [1], [1], [2], [0, 0, 0, 1, 1, 2], [0], [0]>} : vector<1x16x8xf32>, vector<1x8x8xf32>, vector<1x16x8xf32> -> vector<1x16x8xf32>
    "tpu.trace_stop"() : () -> ()
    %57 = vector.extract_strided_slice %56 {offsets = [0, 0, 0], sizes = [1, 8, 8], strides = [1, 1, 1]} : vector<1x16x8xf32> to vector<1x8x8xf32>
    %58 = vector.shape_cast %57 : vector<1x8x8xf32> to vector<8x8xf32>
    %59 = vector.extract_strided_slice %56 {offsets = [0, 8, 0], sizes = [1, 8, 8], strides = [1, 1, 1]} : vector<1x16x8xf32> to vector<1x8x8xf32>
    %60 = vector.shape_cast %59 : vector<1x8x8xf32> to vector<8x8xf32>
    %61 = vector.extract_strided_slice %35 {offsets = [0, 8], sizes = [8, 8], strides = [1, 1]} : vector<8x16xf32> to vector<8x8xf32>
    %62 = vector.shape_cast %61 : vector<8x8xf32> to vector<1x8x8xf32>
    %63 = vector.extract_strided_slice %36 {offsets = [0, 8], sizes = [8, 8], strides = [1, 1]} : vector<8x16xf32> to vector<8x8xf32>
    %64 = vector.shape_cast %63 : vector<8x8xf32> to vector<1x8x8xf32>
    %65 = vector.extract_strided_slice %34 {offsets = [0, 16], sizes = [8, 8], strides = [1, 1]} : vector<8x32xf32> to vector<8x8xf32>
    %66 = vector.shape_cast %65 : vector<8x8xf32> to vector<1x8x8xf32>
    %67 = vector.extract_strided_slice %34 {offsets = [0, 24], sizes = [8, 8], strides = [1, 1]} : vector<8x32xf32> to vector<8x8xf32>
    %68 = vector.shape_cast %67 : vector<8x8xf32> to vector<1x8x8xf32>
    %69 = tpu.concatenate %66, %68 in 1 : vector<1x8x8xf32>, vector<1x8x8xf32> -> vector<1x16x8xf32>
    "tpu.trace_start"() <{level = 10 : i32, message = "bqd,bkd->bqk"}> : () -> ()
    %cst_30 = arith.constant dense<0.000000e+00> : vector<1x16x8xf32>
    %70 = tpu.matmul %69, %62, %cst_30 {dimension_numbers = #tpu.dot_dimension_numbers<[2], [2], [1], [1], [0, 0, 0, 1, 1, 1], [0], [0]>} : vector<1x16x8xf32>, vector<1x8x8xf32>, vector<1x16x8xf32> -> vector<1x16x8xf32>
    "tpu.trace_stop"() : () -> ()
    %cst_31 = arith.constant dense<0xFF800000> : vector<1x16xf32>
    %71 = vector.multi_reduction <maximumf>, %70, %cst_31 [2] : vector<1x16x8xf32> to vector<1x16xf32>
    %72 = vector.shape_cast %71 : vector<1x16xf32> to vector<1x16x1xf32>
    %73 = vector.broadcast %72 : vector<1x16x1xf32> to vector<1x16x8xf32>
    %74 = arith.subf %70, %73 : vector<1x16x8xf32>
    %75 = math.exp %74 : vector<1x16x8xf32>
    %cst_32 = arith.constant dense<0.000000e+00> : vector<1x16xf32>
    %76 = vector.multi_reduction <add>, %75, %cst_32 [2] : vector<1x16x8xf32> to vector<1x16xf32>
    %77 = vector.shape_cast %76 : vector<1x16xf32> to vector<1x16x1xf32>
    %78 = vector.broadcast %77 : vector<1x16x1xf32> to vector<1x16x8xf32>
    %79 = arith.divf %75, %78 : vector<1x16x8xf32>
    "tpu.trace_start"() <{level = 10 : i32, message = "bqk,bkd->bqd"}> : () -> ()
    %cst_33 = arith.constant dense<0.000000e+00> : vector<1x16x8xf32>
    %80 = tpu.matmul %79, %64, %cst_33 {dimension_numbers = #tpu.dot_dimension_numbers<[2], [1], [1], [2], [0, 0, 0, 1, 1, 2], [0], [0]>} : vector<1x16x8xf32>, vector<1x8x8xf32>, vector<1x16x8xf32> -> vector<1x16x8xf32>
    "tpu.trace_stop"() : () -> ()
    %81 = vector.extract_strided_slice %80 {offsets = [0, 0, 0], sizes = [1, 8, 8], strides = [1, 1, 1]} : vector<1x16x8xf32> to vector<1x8x8xf32>
    %82 = vector.shape_cast %81 : vector<1x8x8xf32> to vector<8x8xf32>
    %83 = vector.extract_strided_slice %80 {offsets = [0, 8, 0], sizes = [1, 8, 8], strides = [1, 1, 1]} : vector<1x16x8xf32> to vector<1x8x8xf32>
    %84 = vector.shape_cast %83 : vector<1x8x8xf32> to vector<8x8xf32>
    %85 = tpu.concatenate %58, %60, %82, %84 in 1 : vector<8x8xf32>, vector<8x8xf32>, vector<8x8xf32>, vector<8x8xf32> -> vector<8x32xf32>
    %c0_34 = arith.constant 0 : index
    %c0_35 = arith.constant 0 : index
    %86 = vector.load %arg8[%c0_34, %c0_35] : memref<32x32xf32, #tpu.memory_space<vmem>>, vector<32x32xf32>
    %cst_36 = arith.constant dense<0.000000e+00> : vector<8x32xf32>
    %87 = tpu.matmul %85, %86, %cst_36 {dimension_numbers = #tpu.dot_dimension_numbers<[1], [0], [0], [1], [0, 0, 1, 1], [], []>} : vector<8x32xf32>, vector<32x32xf32>, vector<8x32xf32> -> vector<8x32xf32>
    %c0_37 = arith.constant 0 : index
    %c0_38 = arith.constant 0 : index
    %88 = vector.load %arg9[%c0_37, %c0_38] : memref<1x32xf32, #tpu.memory_space<vmem>>, vector<1x32xf32>
    %89 = vector.broadcast %88 : vector<1x32xf32> to vector<8x32xf32>
    %90 = arith.addf %87, %89 : vector<8x32xf32>
    %91 = vector.shape_cast %90 : vector<8x32xf32> to vector<2x128xf32>
    %c0_39 = arith.constant 0 : index
    %c0_40 = arith.constant 0 : index
    %c0_41 = arith.constant 0 : index
    %92 = vector.load %arg10[%c0_39, %c0_40, %c0_41] : memref<1x2x128xf32, #tpu.memory_space<vmem>>, vector<1x2x128xf32>
    %93 = vector.shape_cast %92 : vector<1x2x128xf32> to vector<2x128xf32>
    %94 = vector.shape_cast %91 : vector<2x128xf32> to vector<1x2x128xf32>
    tpu.vector_store %arg10[%c0_39, %c0_40, %c0_41], %94 {strides = array<i32>} : memref<1x2x128xf32, #tpu.memory_space<vmem>>, vector<1x2x128xf32>,
    return
  }
  func.func @transform_0(%arg0: i32) -> (i32, i32, i32) {
    %c0_i32 = arith.constant 0 : i32
    %c0_i32_0 = arith.constant 0 : i32
    %c0_i32_1 = arith.constant 0 : i32
    return %arg0, %c0_i32, %c0_i32_0 : i32, i32, i32
  }
  func.func @transform_1(%arg0: i32) -> (i32, i32) {
    %c0_i32 = arith.constant 0 : i32
    %c0_i32_0 = arith.constant 0 : i32
    %c0_i32_1 = arith.constant 0 : i32
    return %c0_i32, %c0_i32_0 : i32, i32
  }
  func.func @transform_2(%arg0: i32) -> (i32, i32) {
    %c0_i32 = arith.constant 0 : i32
    %c0_i32_0 = arith.constant 0 : i32
    %c0_i32_1 = arith.constant 0 : i32
    return %c0_i32, %c0_i32_0 : i32, i32
  }
  func.func @transform_3(%arg0: i32) -> (i32, i32) {
    %c0_i32 = arith.constant 0 : i32
    %c0_i32_0 = arith.constant 0 : i32
    %c0_i32_1 = arith.constant 0 : i32
    return %c0_i32, %c0_i32_0 : i32, i32
  }
  func.func @transform_4(%arg0: i32) -> (i32, i32) {
    %c0_i32 = arith.constant 0 : i32
    %c0_i32_0 = arith.constant 0 : i32
    %c0_i32_1 = arith.constant 0 : i32
    return %c0_i32, %c0_i32_0 : i32, i32
  }
  func.func @transform_5(%arg0: i32) -> (i32, i32) {
    %c0_i32 = arith.constant 0 : i32
    %c0_i32_0 = arith.constant 0 : i32
    %c0_i32_1 = arith.constant 0 : i32
    return %c0_i32, %c0_i32_0 : i32, i32
  }
  func.func @transform_6(%arg0: i32) -> (i32, i32) {
    %c0_i32 = arith.constant 0 : i32
    %c0_i32_0 = arith.constant 0 : i32
    %c0_i32_1 = arith.constant 0 : i32
    return %c0_i32, %c0_i32_0 : i32, i32
  }
  func.func @transform_7(%arg0: i32) -> (i32, i32) {
    %c0_i32 = arith.constant 0 : i32
    %c0_i32_0 = arith.constant 0 : i32
    %c0_i32_1 = arith.constant 0 : i32
    return %c0_i32, %c0_i32_0 : i32, i32
  }
  func.func @transform_8(%arg0: i32) -> (i32, i32) {
    %c0_i32 = arith.constant 0 : i32
    %c0_i32_0 = arith.constant 0 : i32
    %c0_i32_1 = arith.constant 0 : i32
    return %c0_i32, %c0_i32_0 : i32, i32
  }
  func.func @transform_9(%arg0: i32) -> (i32, i32, i32) {
    %c0_i32 = arith.constant 0 : i32
    %c0_i32_0 = arith.constant 0 : i32
    %c0_i32_1 = arith.constant 0 : i32
    return %arg0, %c0_i32, %c0_i32_0 : i32, i32, i32
  }
}

module attributes {stable_mosaic.version = 11 : i64} {
  func.func @_mqa_kernel(%arg0: i32, %arg1: memref<1x8x32xf32, #tpu.memory_space<vmem>>, %arg2: memref<32x64xf32, #tpu.memory_space<vmem>>, %arg3: memref<1x64xf32, #tpu.memory_space<vmem>>, %arg4: memref<48x6xf32, #tpu.memory_space<vmem>>, %arg5: memref<6x48xf32, #tpu.memory_space<vmem>>, %arg6: memref<1x48xf32, #tpu.memory_space<vmem>>, %arg7: memref<1x48xf32, #tpu.memory_space<vmem>>, %arg8: memref<32x32xf32, #tpu.memory_space<vmem>>, %arg9: memref<1x32xf32, #tpu.memory_space<vmem>>, %arg10: memref<1x8x32xf32, #tpu.memory_space<vmem>>) attributes {dimension_semantics = [#tpu.dimension_semantics<parallel>], iteration_bounds = array<i64: 2>, scalar_prefetch = 0 : i64, scratch_operands = 0 : i64, tpu.core_type = #tpu.core_type<tc>, window_params = [{transform_indices = @transform_0, window_bounds = array<i64: 1, 8, 32>}, {pipeline_mode = #tpu.pipeline_mode<synchronous>, transform_indices = @transform_1, window_bounds = array<i64: 32, 64>}, {pipeline_mode = #tpu.pipeline_mode<synchronous>, transform_indices = @transform_2, window_bounds = array<i64: 1, 64>}, {pipeline_mode = #tpu.pipeline_mode<synchronous>, transform_indices = @transform_3, window_bounds = array<i64: 48, 6>}, {pipeline_mode = #tpu.pipeline_mode<synchronous>, transform_indices = @transform_4, window_bounds = array<i64: 6, 48>}, {pipeline_mode = #tpu.pipeline_mode<synchronous>, transform_indices = @transform_5, window_bounds = array<i64: 1, 48>}, {pipeline_mode = #tpu.pipeline_mode<synchronous>, transform_indices = @transform_6, window_bounds = array<i64: 1, 48>}, {pipeline_mode = #tpu.pipeline_mode<synchronous>, transform_indices = @transform_7, window_bounds = array<i64: 32, 32>}, {pipeline_mode = #tpu.pipeline_mode<synchronous>, transform_indices = @transform_8, window_bounds = array<i64: 1, 32>}, {transform_indices = @transform_9, window_bounds = array<i64: 1, 8, 32>}]} {
    %c0 = arith.constant 0 : index
    %c0_0 = arith.constant 0 : index
    %c0_1 = arith.constant 0 : index
    %0 = vector.load %arg1[%c0, %c0_0, %c0_1] : memref<1x8x32xf32, #tpu.memory_space<vmem>>, vector<1x8x32xf32>
    %1 = vector.shape_cast %0 : vector<1x8x32xf32> to vector<8x32xf32>
    %c0_2 = arith.constant 0 : index
    %c0_3 = arith.constant 0 : index
    %2 = vector.load %arg2[%c0_2, %c0_3] : memref<32x64xf32, #tpu.memory_space<vmem>>, vector<32x64xf32>
    %cst = arith.constant dense<0.000000e+00> : vector<8x64xf32>
    %3 = tpu.matmul %1, %2, %cst {dimension_numbers = #tpu.dot_dimension_numbers<[1], [0], [0], [1], [0, 0, 1, 1], [], []>} : vector<8x32xf32>, vector<32x64xf32>, vector<8x64xf32> -> vector<8x64xf32>
    %c0_4 = arith.constant 0 : index
    %c0_5 = arith.constant 0 : index
    %4 = vector.load %arg3[%c0_4, %c0_5] : memref<1x64xf32, #tpu.memory_space<vmem>>, vector<1x64xf32>
    %5 = vector.broadcast %4 : vector<1x64xf32> to vector<8x64xf32>
    %6 = arith.addf %3, %5 : vector<8x64xf32>
    %7 = vector.extract_strided_slice %6 {offsets = [0, 0], sizes = [8, 48], strides = [1, 1]} : vector<8x64xf32> to vector<8x48xf32>
    %c0_6 = arith.constant 0 : index
    %c0_7 = arith.constant 0 : index
    %8 = vector.load %arg4[%c0_6, %c0_7] : memref<48x6xf32, #tpu.memory_space<vmem>>, vector<48x6xf32>
    %cst_8 = arith.constant dense<0.000000e+00> : vector<8x6xf32>
    %9 = tpu.matmul %7, %8, %cst_8 {dimension_numbers = #tpu.dot_dimension_numbers<[1], [0], [0], [1], [0, 0, 1, 1], [], []>} : vector<8x48xf32>, vector<48x6xf32>, vector<8x6xf32> -> vector<8x6xf32>
    %cst_9 = arith.constant 1.250000e-01 : f32
    %10 = vector.broadcast %cst_9 : f32 to vector<8x6xf32>
    %11 = arith.mulf %9, %10 : vector<8x6xf32>
    %c0_10 = arith.constant 0 : index
    %c0_11 = arith.constant 0 : index
    %12 = vector.load %arg5[%c0_10, %c0_11] : memref<6x48xf32, #tpu.memory_space<vmem>>, vector<6x48xf32>
    %cst_12 = arith.constant dense<0.000000e+00> : vector<8x48xf32>
    %13 = tpu.matmul %11, %12, %cst_12 {dimension_numbers = #tpu.dot_dimension_numbers<[1], [0], [0], [1], [0, 0, 1, 1], [], []>} : vector<8x6xf32>, vector<6x48xf32>, vector<8x48xf32> -> vector<8x48xf32>
    %14 = arith.subf %7, %13 : vector<8x48xf32>
    %15 = arith.mulf %14, %14 : vector<8x48xf32>
    %c0_13 = arith.constant 0 : index
    %c0_14 = arith.constant 0 : index
    %16 = vector.load %arg4[%c0_13, %c0_14] : memref<48x6xf32, #tpu.memory_space<vmem>>, vector<48x6xf32>
    %cst_15 = arith.constant dense<0.000000e+00> : vector<8x6xf32>
    %17 = tpu.matmul %15, %16, %cst_15 {dimension_numbers = #tpu.dot_dimension_numbers<[1], [0], [0], [1], [0, 0, 1, 1], [], []>} : vector<8x48xf32>, vector<48x6xf32>, vector<8x6xf32> -> vector<8x6xf32>
    %cst_16 = arith.constant 1.250000e-01 : f32
    %18 = vector.broadcast %cst_16 : f32 to vector<8x6xf32>
    %19 = arith.mulf %17, %18 : vector<8x6xf32>
    %cst_17 = arith.constant 9.99999974E-6 : f32
    %20 = vector.broadcast %cst_17 : f32 to vector<8x6xf32>
    %21 = arith.addf %19, %20 : vector<8x6xf32>
    %22 = math.rsqrt %21 : vector<8x6xf32>
    %c0_18 = arith.constant 0 : index
    %c0_19 = arith.constant 0 : index
    %23 = vector.load %arg5[%c0_18, %c0_19] : memref<6x48xf32, #tpu.memory_space<vmem>>, vector<6x48xf32>
    %cst_20 = arith.constant dense<0.000000e+00> : vector<8x48xf32>
    %24 = tpu.matmul %22, %23, %cst_20 {dimension_numbers = #tpu.dot_dimension_numbers<[1], [0], [0], [1], [0, 0, 1, 1], [], []>} : vector<8x6xf32>, vector<6x48xf32>, vector<8x48xf32> -> vector<8x48xf32>
    %25 = arith.mulf %14, %24 : vector<8x48xf32>
    %c0_21 = arith.constant 0 : index
    %c0_22 = arith.constant 0 : index
    %26 = vector.load %arg6[%c0_21, %c0_22] : memref<1x48xf32, #tpu.memory_space<vmem>>, vector<1x48xf32>
    %27 = vector.broadcast %26 : vector<1x48xf32> to vector<8x48xf32>
    %28 = arith.mulf %25, %27 : vector<8x48xf32>
    %c0_23 = arith.constant 0 : index
    %c0_24 = arith.constant 0 : index
    %29 = vector.load %arg7[%c0_23, %c0_24] : memref<1x48xf32, #tpu.memory_space<vmem>>, vector<1x48xf32>
    %30 = vector.broadcast %29 : vector<1x48xf32> to vector<8x48xf32>
    %31 = arith.addf %28, %30 : vector<8x48xf32>
    %32 = vector.extract_strided_slice %31 {offsets = [0, 0], sizes = [8, 32], strides = [1, 1]} : vector<8x48xf32> to vector<8x32xf32>
    %cst_25 = arith.constant 0.353553385 : f32
    %33 = vector.broadcast %cst_25 : f32 to vector<8x32xf32>
    %34 = arith.mulf %32, %33 : vector<8x32xf32>
    %35 = vector.extract_strided_slice %31 {offsets = [0, 32], sizes = [8, 16], strides = [1, 1]} : vector<8x48xf32> to vector<8x16xf32>
    %36 = vector.extract_strided_slice %6 {offsets = [0, 48], sizes = [8, 16], strides = [1, 1]} : vector<8x64xf32> to vector<8x16xf32>
    %37 = vector.extract_strided_slice %35 {offsets = [0, 0], sizes = [8, 8], strides = [1, 1]} : vector<8x16xf32> to vector<8x8xf32>
    %38 = vector.shape_cast %37 : vector<8x8xf32> to vector<1x8x8xf32>
    %39 = vector.extract_strided_slice %36 {offsets = [0, 0], sizes = [8, 8], strides = [1, 1]} : vector<8x16xf32> to vector<8x8xf32>
    %40 = vector.shape_cast %39 : vector<8x8xf32> to vector<1x8x8xf32>
    %41 = vector.extract_strided_slice %34 {offsets = [0, 0], sizes = [8, 8], strides = [1, 1]} : vector<8x32xf32> to vector<8x8xf32>
    %42 = vector.shape_cast %41 : vector<8x8xf32> to vector<1x8x8xf32>
    %43 = vector.extract_strided_slice %34 {offsets = [0, 8], sizes = [8, 8], strides = [1, 1]} : vector<8x32xf32> to vector<8x8xf32>
    %44 = vector.shape_cast %43 : vector<8x8xf32> to vector<1x8x8xf32>
    %45 = tpu.concatenate %42, %44 in 1 : vector<1x8x8xf32>, vector<1x8x8xf32> -> vector<1x16x8xf32>
    "tpu.trace_start"() <{level = 10 : i32, message = "bqd,bkd->bqk"}> : () -> ()
    %cst_26 = arith.constant dense<0.000000e+00> : vector<1x16x8xf32>
    %46 = tpu.matmul %45, %38, %cst_26 {dimension_numbers = #tpu.dot_dimension_numbers<[2], [2], [1], [1], [0, 0, 0, 1, 1, 1], [0], [0]>} : vector<1x16x8xf32>, vector<1x8x8xf32>, vector<1x16x8xf32> -> vector<1x16x8xf32>
    "tpu.trace_stop"() : () -> ()
    %cst_27 = arith.constant dense<0xFF800000> : vector<1x16xf32>
    %47 = vector.multi_reduction <maximumf>, %46, %cst_27 [2] : vector<1x16x8xf32> to vector<1x16xf32>
    %48 = vector.shape_cast %47 : vector<1x16xf32> to vector<1x16x1xf32>
    %49 = vector.broadcast %48 : vector<1x16x1xf32> to vector<1x16x8xf32>
    %50 = arith.subf %46, %49 : vector<1x16x8xf32>
    %51 = math.exp %50 : vector<1x16x8xf32>
    %cst_28 = arith.constant dense<0.000000e+00> : vector<1x16xf32>
    %52 = vector.multi_reduction <add>, %51, %cst_28 [2] : vector<1x16x8xf32> to vector<1x16xf32>
    %53 = vector.shape_cast %52 : vector<1x16xf32> to vector<1x16x1xf32>
    %54 = vector.broadcast %53 : vector<1x16x1xf32> to vector<1x16x8xf32>
    %55 = arith.divf %51, %54 : vector<1x16x8xf32>
    "tpu.trace_start"() <{level = 10 : i32, message = "bqk,bkd->bqd"}> : () -> ()
    %cst_29 = arith.constant dense<0.000000e+00> : vector<1x16x8xf32>
    %56 = tpu.matmul %55, %40, %cst_29 {dimension_numbers = #tpu.dot_dimension_numbers<[2], [1], [1], [2], [0, 0, 0, 1, 1, 2], [0], [0]>} : vector<1x16x8xf32>, vector<1x8x8xf32>, vector<1x16x8xf32> -> vector<1x16x8xf32>
    "tpu.trace_stop"() : () -> ()
    %57 = vector.extract_strided_slice %56 {offsets = [0, 0, 0], sizes = [1, 8, 8], strides = [1, 1, 1]} : vector<1x16x8xf32> to vector<1x8x8xf32>
    %58 = vector.shape_cast %57 : vector<1x8x8xf32> to vector<8x8xf32>
    %59 = vector.extract_strided_slice %56 {offsets = [0, 8, 0], sizes = [1, 8, 8], strides = [1, 1, 1]} : vector<1x16x8xf32> to vector<1x8x8xf32>
    %60 = vector.shape_cast %59 : vector<1x8x8xf32> to vector<8x8xf32>
    %61 = vector.extract_strided_slice %35 {offsets = [0, 8], sizes = [8, 8], strides = [1, 1]} : vector<8x16xf32> to vector<8x8xf32>
    %62 = vector.shape_cast %61 : vector<8x8xf32> to vector<1x8x8xf32>
    %63 = vector.extract_strided_slice %36 {offsets = [0, 8], sizes = [8, 8], strides = [1, 1]} : vector<8x16xf32> to vector<8x8xf32>
    %64 = vector.shape_cast %63 : vector<8x8xf32> to vector<1x8x8xf32>
    %65 = vector.extract_strided_slice %34 {offsets = [0, 16], sizes = [8, 8], strides = [1, 1]} : vector<8x32xf32> to vector<8x8xf32>
    %66 = vector.shape_cast %65 : vector<8x8xf32> to vector<1x8x8xf32>
    %67 = vector.extract_strided_slice %34 {offsets = [0, 24], sizes = [8, 8], strides = [1, 1]} : vector<8x32xf32> to vector<8x8xf32>
    %68 = vector.shape_cast %67 : vector<8x8xf32> to vector<1x8x8xf32>
    %69 = tpu.concatenate %66, %68 in 1 : vector<1x8x8xf32>, vector<1x8x8xf32> -> vector<1x16x8xf32>
    "tpu.trace_start"() <{level = 10 : i32, message = "bqd,bkd->bqk"}> : () -> ()
    %cst_30 = arith.constant dense<0.000000e+00> : vector<1x16x8xf32>
    %70 = tpu.matmul %69, %62, %cst_30 {dimension_numbers = #tpu.dot_dimension_numbers<[2], [2], [1], [1], [0, 0, 0, 1, 1, 1], [0], [0]>} : vector<1x16x8xf32>, vector<1x8x8xf32>, vector<1x16x8xf32> -> vector<1x16x8xf32>
    "tpu.trace_stop"() : () -> ()
    %cst_31 = arith.constant dense<0xFF800000> : vector<1x16xf32>
    %71 = vector.multi_reduction <maximumf>, %70, %cst_31 [2] : vector<1x16x8xf32> to vector<1x16xf32>
    %72 = vector.shape_cast %71 : vector<1x16xf32> to vector<1x16x1xf32>
    %73 = vector.broadcast %72 : vector<1x16x1xf32> to vector<1x16x8xf32>
    %74 = arith.subf %70, %73 : vector<1x16x8xf32>
    %75 = math.exp %74 : vector<1x16x8xf32>
    %cst_32 = arith.constant dense<0.000000e+00> : vector<1x16xf32>
    %76 = vector.multi_reduction <add>, %75, %cst_32 [2] : vector<1x16x8xf32> to vector<1x16xf32>
    %77 = vector.shape_cast %76 : vector<1x16xf32> to vector<1x16x1xf32>
    %78 = vector.broadcast %77 : vector<1x16x1xf32> to vector<1x16x8xf32>
    %79 = arith.divf %75, %78 : vector<1x16x8xf32>
    "tpu.trace_start"() <{level = 10 : i32, message = "bqk,bkd->bqd"}> : () -> ()
    %cst_33 = arith.constant dense<0.000000e+00> : vector<1x16x8xf32>
    %80 = tpu.matmul %79, %64, %cst_33 {dimension_numbers = #tpu.dot_dimension_numbers<[2], [1], [1], [2], [0, 0, 0, 1, 1, 2], [0], [0]>} : vector<1x16x8xf32>, vector<1x8x8xf32>, vector<1x16x8xf32> -> vector<1x16x8xf32>
    "tpu.trace_stop"() : () -> ()
    %81 = vector.extract_strided_slice %80 {offsets = [0, 0, 0], sizes = [1, 8, 8], strides = [1, 1, 1]} : vector<1x16x8xf32> to vector<1x8x8xf32>
    %82 = vector.shape_cast %81 : vector<1x8x8xf32> to vector<8x8xf32>
    %83 = vector.extract_strided_slice %80 {offsets = [0, 8, 0], sizes = [1, 8, 8], strides = [1, 1, 1]} : vector<1x16x8xf32> to vector<1x8x8xf32>
    %84 = vector.shape_cast %83 : vector<1x8x8xf32> to vector<8x8xf32>
    %85 = tpu.concatenate %58, %60, %82, %84 in 1 : vector<8x8xf32>, vector<8x8xf32>, vector<8x8xf32>, vector<8x8xf32> -> vector<8x32xf32>
    %c0_34 = arith.constant 0 : index
    %c0_35 = arith.constant 0 : index
    %86 = vector.load %arg8[%c0_34, %c0_35] : memref<32x32xf32, #tpu.memory_space<vmem>>, vector<32x32xf32>
    %cst_36 = arith.constant dense<0.000000e+00> : vector<8x32xf32>
    %87 = tpu.matmul %85, %86, %cst_36 {dimension_numbers = #tpu.dot_dimension_numbers<[1], [0], [0], [1], [0, 0, 1, 1], [], []>} : vector<8x32xf32>, vector<32x32xf32>, vector<8x32xf32> -> vector<8x32xf32>
    %c0_37 = arith.constant 0 : index
    %c0_38 = arith.constant 0 : index
    %88 = vector.load %arg9[%c0_37, %c0_38] : memref<1x32xf32, #tpu.memory_space<vmem>>, vector<1x32xf32>
    %89 = vector.broadcast %88 : vector<1x32xf32> to vector<8x32xf32>
    %90 = arith.addf %87, %89 : vector<8x32xf32>
    %c0_39 = arith.constant 0 : index
    %c0_40 = arith.constant 0 : index
    %c0_41 = arith.constant 0 : index
    %91 = vector.load %arg10[%c0_39, %c0_40, %c0_41] : memref<1x8x32xf32, #tpu.memory_space<vmem>>, vector<1x8x32xf32>
    %92 = vector.shape_cast %91 : vector<1x8x32xf32> to vector<8x32xf32>
    %93 = vector.shape_cast %90 : vector<8x32xf32> to vector<1x8x32xf32>
    tpu.vector_store %arg10[%c0_39, %c0_40, %c0_41], %93 {strides = array<i32>} : memref<1x8x32xf32, #tpu.memory_space<vmem>>, vector<1x8x32xf32>,
    return
  }
  func.func @transform_0(%arg0: i32) -> (i32, i32, i32) {
    %c0_i32 = arith.constant 0 : i32
    %c0_i32_0 = arith.constant 0 : i32
    %c0_i32_1 = arith.constant 0 : i32
    return %arg0, %c0_i32, %c0_i32_0 : i32, i32, i32
  }
  func.func @transform_1(%arg0: i32) -> (i32, i32) {
    %c0_i32 = arith.constant 0 : i32
    %c0_i32_0 = arith.constant 0 : i32
    %c0_i32_1 = arith.constant 0 : i32
    return %c0_i32, %c0_i32_0 : i32, i32
  }
  func.func @transform_2(%arg0: i32) -> (i32, i32) {
    %c0_i32 = arith.constant 0 : i32
    %c0_i32_0 = arith.constant 0 : i32
    %c0_i32_1 = arith.constant 0 : i32
    return %c0_i32, %c0_i32_0 : i32, i32
  }
  func.func @transform_3(%arg0: i32) -> (i32, i32) {
    %c0_i32 = arith.constant 0 : i32
    %c0_i32_0 = arith.constant 0 : i32
    %c0_i32_1 = arith.constant 0 : i32
    return %c0_i32, %c0_i32_0 : i32, i32
  }
  func.func @transform_4(%arg0: i32) -> (i32, i32) {
    %c0_i32 = arith.constant 0 : i32
    %c0_i32_0 = arith.constant 0 : i32
    %c0_i32_1 = arith.constant 0 : i32
    return %c0_i32, %c0_i32_0 : i32, i32
  }
  func.func @transform_5(%arg0: i32) -> (i32, i32) {
    %c0_i32 = arith.constant 0 : i32
    %c0_i32_0 = arith.constant 0 : i32
    %c0_i32_1 = arith.constant 0 : i32
    return %c0_i32, %c0_i32_0 : i32, i32
  }
  func.func @transform_6(%arg0: i32) -> (i32, i32) {
    %c0_i32 = arith.constant 0 : i32
    %c0_i32_0 = arith.constant 0 : i32
    %c0_i32_1 = arith.constant 0 : i32
    return %c0_i32, %c0_i32_0 : i32, i32
  }
  func.func @transform_7(%arg0: i32) -> (i32, i32) {
    %c0_i32 = arith.constant 0 : i32
    %c0_i32_0 = arith.constant 0 : i32
    %c0_i32_1 = arith.constant 0 : i32
    return %c0_i32, %c0_i32_0 : i32, i32
  }
  func.func @transform_8(%arg0: i32) -> (i32, i32) {
    %c0_i32 = arith.constant 0 : i32
    %c0_i32_0 = arith.constant 0 : i32
    %c0_i32_1 = arith.constant 0 : i32
    return %c0_i32, %c0_i32_0 : i32, i32
  }
  func.func @transform_9(%arg0: i32) -> (i32, i32, i32) {
    %c0_i32 = arith.constant 0 : i32
    %c0_i32_0 = arith.constant 0 : i32
    %c0_i32_1 = arith.constant 0 : i32
    return %arg0, %c0_i32, %c0_i32_0 : i32, i32, i32
  }
}

</mosaic_0001>

<bundles_post_ra>
// kernel: tpu_custom_call.1
= control target key start
LH: loop header
LB: loop body
LE: loop exit
PB: predicated region body
PF: predicated region fallthrough
CT: control target
= control target key end

     0   :  { %s2146_s0 = inlined_call_operand.hbm [shape: f32[2,8,32], index: 0, kind: input, shape index: {}]   ;;  %s2147_s1 = inlined_call_operand.vmem [shape: f32[32,64], index: 1, kind: input, shape index: {}]   ;;  %s2148_s2 = inlined_call_operand.vmem [shape: f32[1,64], index: 2, kind: input, shape index: {}]   ;;  %s2149_s3 = inlined_call_operand.vmem [shape: f32[48,6], index: 3, kind: input, shape index: {}]   ;;  %s2150_s4 = inlined_call_operand.hbm [shape: f32[6,48], index: 4, kind: input, shape index: {}]   ;;  %s2151_s5 = inlined_call_operand.vmem [shape: f32[1,48], index: 5, kind: input, shape index: {}]   ;;  %s2152_s6 = inlined_call_operand.vmem [shape: f32[1,48], index: 6, kind: input, shape index: {}]   ;;  %s2153_s7 = inlined_call_operand.vmem [shape: f32[32,32], index: 7, kind: input, shape index: {}]   ;;  %s2154_s8 = inlined_call_operand.vmem [shape: f32[1,32], index: 8, kind: input, shape index: {}]   ;;  %s2155_s9 = inlined_call_operand.hbm [shape: f32[2,8,32], index: 9, kind: output, shape index: {}]  }
   0x1   :  { %2160 = sst [smem:[#allocation11_spill]] %s2150_s4 }
   0x2   :  { %14 = vsyncpa [#allocation3], 0 }
   0x3   :  { %16 = vsyncpa [#allocation3 + $0x1], 0 }
   0x4   :  { %17 = vsyncpa [#allocation6], 0 }
   0x5   :  { %18 = vsyncpa [#allocation4], 0 }
   0x6   :  { %20 = vsyncpa [#allocation4 + $0x1], 0  ;;  %s1829_s30 = smov 0   ;;  %s1831_s10 = smov 0  }
   0x7   :  { %s1833_s11 = smov 0   ;;  %s1835_s12 = smov 0  }
   0x8 LB: > { %s1850_s13 = sadd.s32 4294967295, %s1762_s12   ;;  %s1359_s14 = sadd.s32 4294967294, %s1762_s12   ;;  %s1762_s12 = sphi %s1835_s12, %s2183_s12   ;;  %s1758_s11 = sphi %s1833_s11, %s2182_s11   ;;  %s1754_s10 = sphi %s1831_s10, %s2181_s10   ;;  %s1750_s30 = sphi %s1829_s30, %s2180_s30  }
   0x9   : > { %p46_p0 = scmp.ne.s32.totalorder %s1754_s10, %s1750_s30  ;;  %p2156_p1 = scmp.eq.s32.totalorder %s1850_s13, 0 }
   0xa   : > { %p244_p3 = scmp.eq.s32.totalorder %s1359_s14, 1  ;;  %p1360_p5 = scmp.ge.s32.totalorder %s1762_s12, 1 }
   0xb   : > { %p1859_p4 = por %p2156_p1, %p46_p0  ;;  %p251_p7 = scmp.lt.s32.totalorder %s1762_s12, 3 }
   0xc   : > { %p1864_p6 = por %p244_p3, %p46_p0  ;;  %s1764_s18 = smov [#allocation5]  }
   0xd   : > { %s2161_s15 = scalar_select %p1859_p4, 1, 0 }
   0xe   : > { %s2162_s16 = scalar_select %p1864_p6, 1, 0 }
   0xf   : > { %p1869_p8 = pnand %p1360_p5, %p251_p7  ;;  %s273_s19 = sshll.u32 %s1764_s18, 4  ;;  %s274_s19 = int_to_ptr.vmem [resolvable:$true] %s273_s19 }
  0x10   : > { %s1877_s20 = sadd.s32 1, %s1762_s12   ;;  %s33_s24 = sadd.s32 1, %s1758_s11 }
  0x11   : > { %s2163_s17 = scalar_select %p1869_p8, 1, 0 }
  0x12   : > { %p1555_p10 = pneg %p1869_p8  ;;  %s30_s22 = ssub.s32 %s1762_s12, %s1877_s20 }
  0x13   : > { %p1887_p12 = scmp.eq.s32.totalorder %s30_s22, 0  ;;  %s2166_s4 = sld [smem:[#allocation11_spill]] }
  0x14   : > { %p1881_p11 = pnand %p1555_p10, %p2156_p1 }
  0x15   : > { %s2165_s23 = scalar_select %p1887_p12, 1, 0 }
  0x16   : > { %p1636_p3 = pneg %p1881_p11 }
  0x19   : > { %s1634_s27 = scalar_lea.hbm %s2166_s4, 128 }
  0x1a   : > { %p1635_p0 = scmp.ne.s32.totalorder %s2166_s4, %s1634_s27  ;;  %p1641_p10 = scmp.lt.u32.totalorder %s1634_s27, %s2166_s4 }
  0x1c   : > { %p1637_p5 = pnand %p1636_p3, %p1635_p0 }
  0x1e   : > { %p1638_p7 = pneg %p1637_p5 }
  0x20   : > { %p1643_p9 = pnand %p1641_p10, %p1638_p7 }
  0x22   : > { %1646 = shalt.err (!%p1643_p9)
}
  0x23   : > { %s1647_s22 = scalar_lea.vmem %s274_s19, 128  ;;  %p1655_p6 = scmp.lt.s32.totalorder %s274_s19, %s274_s19 }
  0x24   : > { %p1648_p1 = scmp.ne.s32.totalorder %s274_s19, %s1647_s22  ;;  %p1656_p4 = scmp.lt.s32.totalorder %s1647_s22, %s1647_s22 }
  0x26   : > { %p1650_p2 = pnand %p1648_p1, %p1636_p3  ;;  %p1657_p8 = por %p1656_p4, %p1655_p6 }
  0x28   : > { %p1651_p13 = pneg %p1650_p2 }
  0x2a   : > { %p1658_p12 = pnand %p1657_p8, %p1651_p13 }
  0x2c   : > { %1661 = shalt.err (!%p1658_p12)
}
  0x2d   : > { %1558 = dma.hbm_to_vmem [thread:$0]  (!%p1881_p11), %s2166_s4, 128, %s274_s19, [#allocation6]  }
  0x2e   : > { %p2167_p1 = scmp.ne.s32.totalorder %s2165_s23, 0  ;;  %p41_p2 = scmp.eq.s32.totalorder %s1762_s12, 0 }
  0x2f   : > { %p2168_p4 = scmp.ne.s32.totalorder %s1758_s11, %s1754_s10  ;;  %p2169_p6 = scmp.eq.s32.totalorder %s1850_s13, 1 }
  0x30   : > { %s1913_s27 = scalar_select %p2167_p1, %s1758_s11, %s33_s24  }
  0x31   : > { %p1921_p8 = por %p2169_p6, %p2168_p4  ;;  %p1568_p9 = scmp.lt.s32.totalorder %s1762_s12, 2 }
  0x32   : > { %s296_s28 = sand.u32 1, %s1758_s11   ;;  %p2171_p12 = pmov %p2168_p4 }
  0x33   : > { %s1363_s29 = sshll.u32 %s296_s28, 3  ;;  %s1364_s14 = sshll.u32 %s1762_s12, 7 }
  0x34   : > { %p42_p13 = por %p41_p2, %p2171_p12  ;;  %s1934_s19 = scalar_lea.hbm %s2146_s0, %s1364_s14 }
  0x35   : > { %s300_s23 = scalar_lea.vmem [#allocation2], %s1363_s29  ;;  %s297_s26 = scalar_lea.sflag [#allocation3], %s296_s28 }
  0x36   : > { %s307_s24 = sshll.u32 %s300_s23, 4  ;;  %p1936_p11 = pnand %p1568_p9, %p42_p13  ;;  %s1940_s24 = int_to_ptr.vmem [resolvable:$true] %s307_s24 }
  0x37   : > { %s1662_s4 = scalar_lea.hbm %s1934_s19, 128  ;;  %s1667_s18 = scalar_lea.hbm %s2146_s0, 256 }
  0x38   : > { %p1663_p0 = scmp.ne.s32.totalorder %s1934_s19, %s1662_s4  ;;  %p1664_p3 = pneg %p1936_p11 }
  0x39   : > { %p1668_p10 = scmp.lt.u32.totalorder %s1934_s19, %s2146_s0  ;;  %p1669_p1 = scmp.lt.u32.totalorder %s1667_s18, %s1662_s4 }
  0x3a   : > { %p1665_p5 = pnand %p1664_p3, %p1663_p0  ;;  %p1671_p4 = scmp.lt.u32.totalorder %s1662_s4, %s1934_s19 }
  0x3b   : > { %p1670_p2 = por %p1669_p1, %p1668_p10 }
  0x3c   : > { %p1666_p7 = pneg %p1665_p5 }
  0x3d   : > { %p1672_p6 = por %p1671_p4, %p1670_p2 }
  0x3f   : > { %p1673_p9 = pnand %p1672_p6, %p1666_p7 }
  0x41   : > { %1676 = shalt.err (!%p1673_p9)
}
  0x42   : > { %s1677_s28 = scalar_lea.vmem %s1940_s24, 128  ;;  %s1765_s14 = smov [#allocation2]  }
  0x43   : > { %p1678_p12 = scmp.ne.s32.totalorder %s1940_s24, %s1677_s28  ;;  %s1682_s29 = sshll.u32 %s1765_s14, 4  ;;  %s1683_s29 = int_to_ptr.vmem [resolvable:$false] %s1682_s29 }
  0x44   : > { %s1684_s22 = scalar_lea.vmem %s1683_s29, 256  ;;  %p1685_p5 = scmp.lt.s32.totalorder %s1940_s24, %s1683_s29 }
  0x45   : > { %p1680_p13 = pnand %p1678_p12, %p1664_p3  ;;  %p1686_p10 = scmp.lt.s32.totalorder %s1684_s22, %s1677_s28 }
  0x47   : > { %p1681_p0 = pneg %p1680_p13  ;;  %p1687_p1 = por %p1686_p10, %p1685_p5 }
  0x49   : > { %p1688_p2 = pnand %p1687_p1, %p1681_p0 }
  0x4b   : > { %1691 = shalt.err (!%p1688_p2)
}
  0x4c   : > { %1562 = dma.hbm_to_vmem [thread:$0]  (!%p1936_p11), %s1934_s19, 128, %s1940_s24, %s297_s26  }
  0x4d   : > { %p2173_p7 = scmp.ne.s32.totalorder %s2163_s17, 0 }
  0x4e   : > { %s1970_s4 = sand.u32 (!%p2173_p7), 1, %s1754_s10   ;;  %p2174_p3 = scmp.ne.s32.totalorder (!%p2173_p7), %s2161_s15, 0 }
  0x4f   : > { %316 = sbr.rel (%p2173_p7) target bundleno = 2507 (0x9cb), region = 56  ;;  %s2159_s18 = sshll.u32 (!%p2173_p7), %s1970_s4, 3 }
  0x50   : > { %s319_s23 = scalar_lea.sflag (!%p2173_p7), [#allocation3], %s1970_s4  ;;  %s322_s28 = scalar_lea.vmem (!%p2173_p7), [#allocation2], %s2159_s18 }
  0x56   : > { %1737 = dma.done.wait (%p2174_p3), %s319_s23, 128  }
  0x57   : > { %1739 = vsyncadd (%p2174_p3), %s319_s23, 4294967168  ;;  %p2175_p11 = scmp.eq.s32.totalorder %s1850_s13, 0 }
  0x59   : > { %1741 = dma.done.wait (%p2175_p11), [#allocation6], 128   ;;  %p2176_p4 = pmov %p2175_p11 }
  0x5a   : > { %v1766_v0 = vmov 0.0|0.0   ;;  %vm1767_vm0 = vmmov 0   ;;  %v1768_v1 = vmov 0.0   ;;  %v362_v2 = vld [vmem:[%s2147_s1] sm:$0xff]  ;;  %v363_v3 = vld [vmem:[%s2147_s1 + $0x8] sm:$0xff]  ;;  %v364_v4 = vld [vmem:[%s2147_s1 + $0x10] sm:$0xff] }
  0x5b   : > { %1743 = vsyncadd (%p2176_p4), [#allocation6], 4294967168  ;;  %1517 = vmatprep.subr.bf16.mxu0 %v1766_v0  ;;  %1443 = vmatprep.mubr.msk.f32.mxu0 %vm1767_vm0, %v1768_v1  ;;  %v1518_v5 = vpack.c.bf16 %v363_v3, %v362_v2  ;;  %v365_v6 = vld [vmem:[%s2147_s1 + $0x18] sm:$0xff]  ;;  %v447_v7 = vld [vmem:[%s2149_s3] sm:$0xff]  ;;  %vm373_vm1 = vcmask 261120   ;;  %vm453_vm2 = vcmask 392192  }
  0x5c   : > { %1523 = vmatprep.subr.bf16.mxu1 %v1766_v0  ;;  %1458 = vmatprep.mubr.msk.f32.mxu1 %vm1767_vm0, %v1768_v1  ;;  %v448_v8 = vld [vmem:[%s2149_s3 + $0x8] sm:$0xff]  ;;  %v449_v9 = vld [vmem:[%s2149_s3 + $0x10] sm:$0xff]  ;;  %v450_v10 = vld [vmem:[%s2149_s3 + $0x18] sm:$0xff]  ;;  %v1521_v11 = vpack.c.bf16 %v365_v6, %v364_v4  ;;  %vm533_vm3 = vcmask 1045504   ;;  %vm529_vm4 = vcmask 48128   ;;  %vm782_vm5 = vcmask 64512  }
  0x5d   : > { %1519 = vmatpush3.bf16.msra.mxu0 %v1518_v5  ;;  %v1524_v12 = vpack.c.bf16 %v448_v8, %v447_v7  ;;  %v1527_v13 = vpack.c.bf16 %v450_v10, %v449_v9  ;;  %v361_v14 = vld [vmem:[%s322_s28] sm:$0xff]  ;;  %v528_v22 = vld [vmem:[#allocation5] sm:$0x3f]  ;;  %s1769_s24 = smov 88   ;;  %s1770_s25 = smov 120   ;;  %vm1176_vm6 = vcmask 130048  }
  0x5e   : > { %1520 = vmatprep.subr.bf16.mxu0 %v1766_v0  ;;  %v451_v15 = vld [vmem:[%s2149_s3 + $0x20] sm:$0xff]  ;;  %v452_v16 = vld [vmem:[%s2149_s3 + $0x28] sm:$0xff]  ;;  %s1771_s18 = smov 112   ;;  %s1772_s26 = smov 96   ;;  %vm1178_vm7 = vcmask 195584  }
  0x5f   : > { %1525 = vmatpush3.bf16.msra.mxu1 %v1524_v12  ;;  %v1530_v17 = vpack.c.bf16 %v452_v16, %v451_v15  ;;  %v1369_v18 = vld [vmem:[%s2148_s2] ss:$0 sm:$0xff]  ;;  %s1773_s28 = smov 72   ;;  %s1774_s14 = smov 80  }
  0x60   : > { %1526 = vmatprep.subr.bf16.mxu1 %v1766_v0  ;;  %v1377_v36 = vld [vmem:[%s2151_s5] ss:$0 sm:$0xff]  ;;  %s1392_s22 = sshll.u32 %s1850_s13, 7  ;;  %s2177_s23 = sshll.u32 %s1970_s4, 3 }
  0x61   : > { %1522 = vmatpush3.bf16.msra.mxu0 %v1521_v11  ;;  %v1378_v39 = vld [vmem:[%s2152_s6] ss:$0 sm:$0xff]  ;;  %s360_s15 = scalar_lea.vmem [#allocation7], %s2177_s23 }
  0x62   : > { %1532 = vmatprep.subr.bf16.mxu0 %v1766_v0  ;;  %s1279_s17 = sshll.u32 %s360_s15, 4  ;;  %s2103_s17 = int_to_ptr.vmem [resolvable:$true] %s1279_s17 }
  0x63   : > { %1528 = vmatpush3.bf16.msra.mxu1 %v1527_v13  ;;  %s1692_s13 = scalar_lea.vmem %s2103_s17, 128 }
  0x64   : > { %1444 = vmatmul.mubr.msk.f32.vlgmr.msra.gmra.mrb[0].mxu0 %vm373_vm1, %v361_v14  ;;  %1529 = vmatprep.subr.bf16.mxu1 %v1766_v0  ;;  %p1693_p6 = scmp.ne.s32.totalorder %s2103_s17, %s1692_s13 }
  0x65   : > { %1534 = vmatpush3.bf16.msra.mxu0 %v1524_v12  ;;  %1478 = vmatprep.mubr.msk.f32.mxu0 %vm1767_vm0, %v1768_v1 }
  0x66   : > { %1535 = vmatprep.subr.bf16.mxu0 %v1766_v0  ;;  %p1694_p9 = pnand %p1693_p6, %p1921_p8 }
  0x67   : > { %1531 = vmatpush3.bf16.msra.mxu1 %v1530_v17 }
  0x68   : > { %1461 = vmatprep.subr.mxu1 %v1768_v1  ;;  %p1695_p12 = pneg %p1694_p9 }
  0x69   : > { %1537 = vmatpush3.bf16.msra.mxu0 %v1527_v13 }
  0x6a   : > { %1538 = vmatprep.subr.bf16.mxu0 %v1766_v0 }
  0x6d   : > { %1540 = vmatpush3.bf16.msra.mxu0 %v1530_v17 }
 0x137   : > { %v443_v19 = vpop.f32.mrb[0].mxu0 }
 0x138   : > { %v2033_v20 = vadd.f32 %v1369_v18, %v443_v19  ;;  %v1445_v21 = vpop.f32.mrb[1].mxu0 }
 0x13a   : > { %1459 = vmatmul.mubr.msk.f32.vlgmr.msra.gmra.mrb[0].mxu1 %vm453_vm2, %v2033_v20 }
 0x13b   : > { %1462 = vmatpush3.msk.msra.mxu1 %vm533_vm3, %v528_v22  ;;  %1463 = vmatprep.mubr.msk.f32.mxu1 %vm1767_vm0, %v1768_v1 }
 0x13c   : > { %1481 = vmatprep.subr.mxu1 %v1768_v1 }
 0x20d   : > { %v523_v23 = vpop.f32.mrb[0].mxu1 }
 0x20e   : > { %v527_v24 = vmul.f32 0.125, %v523_v23  ;;  %v1460_v25 = vpop.f32.mrb[1].mxu1 }
 0x210   : > { %1464 = vmatmul.mubr.msk.f32.vlgmr.msra.gmra.mrb[2].mxu1 %vm529_vm4, %v527_v24 }
 0x211   : > { %1482 = vmatpush3.msk.msra.mxu1 %vm533_vm3, %v528_v22  ;;  %1483 = vmatprep.mubr.msk.f32.mxu1 %vm1767_vm0, %v1768_v1 }
 0x2e3   : > { %v603_v26 = vpop.f32.mrb[2].mxu1 }
 0x2e4   : > { %v607_v27 = vsub.f32 %v2033_v20, %v603_v26  ;;  %v1465_v28 = vpop.f32.mrb[3].mxu1 }
 0x2e5   : > { %v1181_v28 = vld [vmem:[%s2153_s7 + $0x8] sm:$0xff] }
 0x2e6   : > { %v608_v29 = vmul.f32 %v607_v27, %v607_v27 }
 0x2e8   : > { %1479 = vmatmul.mubr.msk.f32.vlgmr.msra.gmra.mrb[2].mxu0 %vm453_vm2, %v608_v29 }
 0x3bb   : > { %v678_v30 = vpop.f32.mrb[2].mxu0 }
 0x3bc   : > { %v682_v31 = vmul.f32 0.125, %v678_v30  ;;  %v1480_v32 = vpop.f32.mrb[3].mxu0  ;;  %v1182_v30 = vld [vmem:[%s2153_s7 + $0x10] sm:$0xff] }
 0x3be   : > { %v683_v33 = vadd.f32 1e-05, %v682_v31  ;;  %v1183_v31 = vld [vmem:[%s2153_s7 + $0x18] sm:$0xff] }
 0x3bf   : > { %v1545_v32 = vpack.c.bf16 %v1183_v31, %v1182_v30 }
 0x3c0   : > { %1616 = vrsqrt.f32 %v683_v33 }
 0x3ca   : > { %v1617_v34 = vpop.eup %1616 }
 0x3cb   : > { %1484 = vmatmul.mubr.msk.f32.vlgmr.msra.gmra.mrb[4].mxu1 %vm529_vm4, %v1617_v34 }
 0x49e   : > { %v754_v35 = vpop.f32.mrb[4].mxu1 }
 0x49f   : > { %v758_v37 = vmul.f32 %v754_v35, %v607_v27  ;;  %v1485_v38 = vpop.f32.mrb[5].mxu1  ;;  %v1180_v27 = vld [vmem:[%s2153_s7] sm:$0xff] }
 0x4a0   : > { %v1542_v29 = vpack.c.bf16 %v1181_v28, %v1180_v27 }
 0x4a1   : > { %v766_v40 = vmul.f32 %v1377_v36, %v758_v37 }
 0x4a3   : > { %v774_v41 = vadd.f32 %v1378_v39, %v766_v40 }
 0x4a5   : > { %974 = vrot.lane.b32.xlu1 %v774_v41, %s1769_s24  ;;  %v775_v42 = vmul.f32 0.35355338, %v774_v41 }
 0x4a7   : > { %777 = vrot.lane.b32.xlu0 %v775_v42, %s1770_s25  ;;  %1488 = vmatprep.mubr.msk.f32.mxu1 %vm782_vm5, %v775_v42  ;;  %s2101_s25 = scalar_lea.hbm %s2155_s9, %s1392_s22 }
 0x4a9   : > { %970 = vrot.lane.b32.xlu1 %v775_v42, %s1771_s18  ;;  %v1389_v42 = vld [vmem:[%s2154_s8] ss:$0 sm:$0xff] }
 0x4ab   : > { %780 = vrot.lane.b32.xlu0 %v774_v41, %s1772_s26  ;;  %s1776_s26 = smov 24  }
 0x517   : > { %v975_v43 = vpop.permute.xlu1 %974 }
 0x518   : > { %1496 = vmatprep.subr.msk.mxu0 %vm782_vm5, %v975_v43 }
 0x519   : > { %1497 = vmatpush3.xpose.msk.msra.mxu0 %vm782_vm5, %v975_v43  ;;  %v778_v44 = vpop.permute.xlu0 %777 }
 0x51a   : > { %972 = vrot.lane.b32.xlu0 %v778_v44, %s1771_s18  ;;  %1541 = vmatprep.subr.bf16.mxu0 %v1766_v0  ;;  %s1775_s18 = smov 8  }
 0x51b   : > { %v971_v45 = vpop.permute.xlu1 %970 }
 0x51c   : > { %1498 = vmatprep.mubr.msk.f32.mxu0 %vm782_vm5, %v971_v45 }
 0x51d   : > { %v781_v46 = vpop.permute.xlu0 %780 }
 0x51e   : > { %1486 = vmatprep.subr.msk.mxu1 %vm782_vm5, %v781_v46 }
 0x51f   : > { %1487 = vmatpush3.xpose.msk.msra.mxu1 %vm782_vm5, %v781_v46 }
 0x522   : > { %1489 = vmatmul.mubr.msk.f32.vlgmr.msra.gmra.mrb[6].mxu1 %vm782_vm5, %v778_v44 }
 0x58c   : > { %v973_v47 = vpop.permute.xlu0 %972 }
 0x58d   : > { %1499 = vmatmul.mubr.msk.f32.vlgmr.msra.gmra.mrb[4].mxu0 %vm782_vm5, %v973_v47 }
 0x58e   : > { %1514 = vmatprep.mubr.msk.f32.mxu0 %vm1767_vm0, %v1768_v1  ;;  %1543 = vmatpush3.bf16.msra.mxu0 %v1542_v29 }
 0x58f   : > { %1544 = vmatprep.subr.bf16.mxu0 %v1766_v0 }
 0x592   : > { %1546 = vmatpush3.bf16.msra.mxu0 %v1545_v32 }
 0x5f5   : > { %v1490_v48 = vpop.f32.mrb[6].mxu1 }
 0x5f6   : > { %v855_v49 = vpop.f32.mrb[7].mxu1  ;;  %v867_v50 = vsel %vm782_vm5, %v1490_v48, -inf }
 0x5f7   : > { %868 = vmax.xlane.f32.xlu0 %v867_v50  ;;  %v864_v51 = vsel %vm782_vm5, %v855_v49, -inf }
 0x5f8   : > { %865 = vmax.xlane.f32.xlu1 %v864_v51 }
 0x660   : > { %v1500_v52 = vpop.f32.mrb[4].mxu0 }
 0x661   : > { %v1048_v53 = vpop.f32.mrb[5].mxu0  ;;  %v1060_v54 = vsel %vm782_vm5, %v1500_v52, -inf }
 0x662   : > { %1061 = vmax.xlane.f32.xlu1 %v1060_v54  ;;  %v1057_v55 = vsel %vm782_vm5, %v1048_v53, -inf }
 0x663   : > { %1058 = vmax.xlane.f32.xlu0 %v1057_v55 }
 0x684   : > { %v869_v56 = vpop.xlane.xlu0 %868 }
 0x685   : > { %v871_v57 = vsub.f32 %v1490_v48, %v869_v56  ;;  %v866_v58 = vpop.xlane.xlu1 %865 }
 0x686   : > { %v870_v59 = vsub.f32 %v855_v49, %v866_v58 }
 0x687   : > { %v874_v60 = vmul.f32 1.442695, %v871_v57 }
 0x688   : > { %v872_v61 = vmul.f32 1.442695, %v870_v59 }
 0x689   : > { %1618 = vpow2.f32 %v874_v60 }
 0x68a   : > { %1620 = vpow2.f32 %v872_v61 }
 0x693   : > { %v1619_v62 = vpop.eup %1618 }
 0x694   : > { %v1621_v63 = vpop.eup %1620  ;;  %v879_v1 = vsel %vm782_vm5, %v1619_v62, 0.0 }
 0x695   : > { %880 = vadd.xlane.f32.xlu1 %v879_v1  ;;  %v876_v2 = vsel %vm782_vm5, %v1621_v63, 0.0 }
 0x696   : > { %877 = vadd.xlane.f32.xlu0 %v876_v2 }
 0x6ef   : > { %v1062_v3 = vpop.xlane.xlu1 %1061 }
 0x6f0   : > { %v1064_v4 = vsub.f32 %v1500_v52, %v1062_v3  ;;  %v1059_v5 = vpop.xlane.xlu0 %1058 }
 0x6f1   : > { %v1063_v6 = vsub.f32 %v1048_v53, %v1059_v5 }
 0x6f2   : > { %v1067_v7 = vmul.f32 1.442695, %v1064_v4 }
 0x6f3   : > { %v1065_v8 = vmul.f32 1.442695, %v1063_v6 }
 0x6f4   : > { %1622 = vpow2.f32 %v1067_v7 }
 0x6f5   : > { %1624 = vpow2.f32 %v1065_v8 }
 0x6fe   : > { %v1623_v9 = vpop.eup %1622 }
 0x6ff   : > { %v1625_v10 = vpop.eup %1624  ;;  %v1072_v11 = vsel %vm782_vm5, %v1623_v9, 0.0 }
 0x700   : > { %1073 = vadd.xlane.f32.xlu1 %v1072_v11  ;;  %v1069_v12 = vsel %vm782_vm5, %v1625_v10, 0.0 }
 0x701   : > { %1070 = vadd.xlane.f32.xlu0 %v1069_v12 }
 0x711   : > { %1079 = vrot.lane.b32.xlu1 %v2033_v20, %s1773_s28  ;;  %s1777_s28 = smov 16  }
 0x717   : > { %886 = vrot.lane.b32.xlu0 %v2033_v20, %s1774_s14 }
 0x722   : > { %v881_v16 = vpop.xlane.xlu1 %880 }
 0x723   : > { %v878_v13 = vpop.xlane.xlu0 %877 }
 0x724   : > { %1626 = vrcp.f32 %v878_v13 }
 0x725   : > { %1628 = vrcp.f32 %v881_v16 }
 0x72e   : > { %v1627_v14 = vpop.eup %1626 }
 0x72f   : > { %v883_v15 = vmul.f32 %v1627_v14, %v1621_v63  ;;  %v1629_v19 = vpop.eup %1628 }
 0x730   : > { %v885_v22 = vmul.f32 %v1629_v19, %v1619_v62 }
 0x731   : > { %1493 = vmatprep.mubr.msk.f32.mxu1 %vm782_vm5, %v883_v15 }
 0x78d   : > { %v1074_v17 = vpop.xlane.xlu1 %1073 }
 0x78e   : > { %1630 = vrcp.f32 %v1074_v17  ;;  %v1071_v18 = vpop.xlane.xlu0 %1070 }
 0x78f   : > { %1632 = vrcp.f32 %v1071_v18 }
 0x791   : > { %v1080_v23 = vpop.permute.xlu1 %1079 }
 0x792   : > { %v887_v21 = vpop.permute.xlu0 %886 }
 0x793   : > { %1491 = vmatprep.subr.mxu1 %v887_v21 }
 0x794   : > { %1492 = vmatpush3.msra.mxu1 %v887_v21 }
 0x795   : > { %1494 = vmatmul.mubr.msk.f32.vlgmr.msra.gmra.mrb[8].mxu1 %vm782_vm5, %v885_v22  ;;  %1501 = vmatprep.subr.mxu1 %v1080_v23 }
 0x796   : > { %1502 = vmatpush3.msra.mxu1 %v1080_v23 }
 0x798   : > { %v1631_v20 = vpop.eup %1630 }
 0x799   : > { %v1633_v24 = vpop.eup %1632  ;;  %v1078_v26 = vmul.f32 %v1631_v20, %v1623_v9 }
 0x79a   : > { %v1076_v25 = vmul.f32 %v1633_v24, %v1625_v10 }
 0x79c   : > { %1503 = vmatprep.mubr.msk.f32.mxu1 %vm782_vm5, %v1076_v25 }
 0x79d   : > { %1504 = vmatmul.mubr.msk.f32.vlgmr.msra.gmra.mrb[10].mxu1 %vm782_vm5, %v1078_v26 }
 0x868   : > { %v1495_v33 = vpop.f32.mrb[8].mxu1 }
 0x869   : > { %1164 = vrot.lane.b32.xlu1 %v1495_v33, %s1775_s18  ;;  %v961_v34 = vpop.f32.mrb[9].mxu1  ;;  %s1266_s18 = scalar_lea.sflag [#allocation4], %s1970_s4 }
 0x870   : > { %v1505_v35 = vpop.f32.mrb[10].mxu1 }
 0x871   : > { %1172 = vrot.lane.b32.xlu1 %v1505_v35, %s1776_s26  ;;  %v1154_v0 = vpop.f32.mrb[11].mxu1  ;;  %s1778_s26 = smov [#allocation7]  }
 0x872   : > { %1168 = vrot.lane.b32.xlu0 %v1154_v0, %s1777_s28  ;;  %s1696_s28 = sshll.u32 %s1778_s26, 4  ;;  %s1697_s28 = int_to_ptr.vmem [resolvable:$false] %s1696_s28 }
 0x873   : > { %s1698_s14 = scalar_lea.vmem %s1697_s28, 256  ;;  %p1699_p13 = scmp.lt.s32.totalorder %s2103_s17, %s1697_s28 }
 0x874   : > { %p1700_p0 = scmp.lt.s32.totalorder %s1698_s14, %s1692_s13 }
 0x876   : > { %p1701_p5 = por %p1700_p0, %p1699_p13 }
 0x878   : > { %p1702_p10 = pnand %p1701_p5, %p1695_p12 }
 0x8db   : > { %v1165_v36 = vpop.permute.xlu1 %1164 }
 0x8dc   : > { %v1175_v37 = vsel %vm782_vm5, %v961_v34, %v1165_v36 }
 0x8e3   : > { %v1173_v39 = vpop.permute.xlu1 %1172 }
 0x8e4   : > { %v1169_v38 = vpop.permute.xlu0 %1168 }
 0x8e5   : > { %v1177_v40 = vsel %vm1176_vm6, %v1175_v37, %v1169_v38 }
 0x8e6   : > { %v1179_v41 = vsel %vm1178_vm7, %v1177_v40, %v1173_v39 }
 0x8e7   : > { %1515 = vmatmul.mubr.msk.f32.vlgmr.msra.gmra.mrb[6].mxu0 %vm373_vm1, %v1179_v41 }
 0x9ba   : > { %v1260_v43 = vpop.f32.mrb[6].mxu0 }
 0x9bb   : > { %v1261_v44 = vadd.f32 %v1389_v42, %v1260_v43  ;;  %v1516_v45 = vpop.f32.mrb[7].mxu0 }
 0x9bd   : > { %1264 = vst.msk [vmem:[%s360_s15] sm:$0xff] %vm373_vm1, %v1261_v44 }
 0x9be   : > { %1705 = shalt.err (!%p1702_p10)
}
 0x9bf   : > { %s1706_s4 = scalar_lea.hbm %s2101_s25, 128  ;;  %s1710_s23 = scalar_lea.hbm %s2155_s9, 256 }
 0x9c0   : > { %p1707_p1 = scmp.ne.s32.totalorder %s2101_s25, %s1706_s4  ;;  %p1711_p3 = scmp.lt.u32.totalorder %s2101_s25, %s2155_s9 }
 0x9c1   : > { %p1712_p11 = scmp.lt.u32.totalorder %s1710_s23, %s1706_s4  ;;  %p1714_p6 = scmp.lt.u32.totalorder %s1706_s4, %s2101_s25 }
 0x9c2   : > { %p1708_p2 = pnand %p1707_p1, %p1921_p8 }
 0x9c3   : > { %p1713_p4 = por %p1712_p11, %p1711_p3 }
 0x9c4   : > { %p1709_p7 = pneg %p1708_p2 }
 0x9c5   : > { %p1715_p9 = por %p1714_p6, %p1713_p4 }
 0x9c7   : > { %p1716_p12 = pnand %p1715_p9, %p1709_p7 }
 0x9c9   : > { %1719 = shalt.err (!%p1716_p12)
}
 0x9ca   : > { %1553 = dma.vmem_to_hbm [thread:$0]  (%p1921_p8), %s2103_s17, 128, %s2101_s25, %s1266_s18  }
 0x9cb PF: > { %s1291_s24 = sand.u32 1, %s1750_s30   ;;  %p2178_p13 = scmp.ne.s32.totalorder %s2162_s16, 0 }
 0x9cc   : > { %p2179_p0 = scmp.ge.s32.totalorder %s1762_s12, 2  ;;  %s1292_s13 = scalar_lea.sflag [#allocation4], %s1291_s24 }
 0x9ce   : > { %p1564_p5 = pnand %p2179_p0, %p2178_p13 }
 0x9d0   : > { %1745 = dma.done.wait (!%p1564_p5), %s1292_s13, 128  }
 0x9d1   : > { %1747 = vsyncadd (!%p1564_p5), %s1292_s13, 4294967168  ;;  %p23_p10 = scmp.ge.s32.totalorder %s1877_s20, 4   ;;  %s2180_s30 = smov %s1754_s10 }
 0x9d2   : > { %s2181_s10 = smov %s1758_s11  ;;  %s2182_s11 = smov %s1913_s27 }
 0x9d3   : > { %s2183_s12 = smov %s1877_s20  ;;  %25 = sbr.rel (!%p23_p10) target bundleno = 8 (0x8), region = 105 }
 0x9da   :  { %1297 = vsyncpa [#allocation3], 1 }
 0x9db   :  { %1299 = vsyncpa [#allocation3 + $0x1], 1 }
 0x9dc   :  { %1300 = vsyncpa [#allocation6], 1 }
 0x9dd   :  { %1301 = vsyncpa [#allocation4], 1 }
 0x9de   :  { %1303 = vsyncpa [#allocation4 + $0x1], 1 }

</bundles_post_ra>
